<compile_context>
chip_gen: v6e
topology: v6e:2x2x1
jax: 0.10.0
libtpu: 0.0.40
codegen_flags: <defaults>
</compile_context>

<pallas_src>
import math
from functools import partial

import jax
import jax.numpy as jnp
import numpy as np
from jax import lax
from jax.experimental import pallas as pl
from jax.experimental.pallas import tpu as pltpu


def _mha_kernel(xq_ref, xkv_ref, wq_ref, wk_ref, wv_ref, wo_ref, bo_ref,
                out_ref, q_scr, m_scr, l_scr, acc_scr, o_scr,
                *, inv_kdim: float):
    """One grid step (b, qi, h, ki): one head x one KV tile of one (batch, q-tile)."""
    h = pl.program_id(2)
    ki = pl.program_id(3)
    nh = pl.num_programs(2)
    nk = pl.num_programs(3)

    # ---- per-(b, qi) init: zero the fused Wo accumulator ---------------------
    @pl.when(jnp.logical_and(h == 0, ki == 0))
    def _():
        o_scr[...] = jnp.zeros_like(o_scr)

    # ---- per-(b, qi, h) init: project Q once (scale hoisted), reset softmax --
    @pl.when(ki == 0)
    def _():
        q = jnp.dot(xq_ref[...], wq_ref[...],
                    preferred_element_type=jnp.float32)          # (tq, hd)
        q_scr[...] = q * inv_kdim
        m_scr[...] = jnp.full_like(m_scr, -jnp.inf)
        l_scr[...] = jnp.zeros_like(l_scr)
        acc_scr[...] = jnp.zeros_like(acc_scr)

    # ---- K/V projection for this head & KV tile ------------------------------
    k = jnp.dot(xkv_ref[...], wk_ref[...], preferred_element_type=jnp.float32)
    v = jnp.dot(xkv_ref[...], wv_ref[...], preferred_element_type=jnp.float32)

    # scores: (tq, hd) x (tk, hd)^T -> (tq, tk), contraction over head_dim
    s = lax.dot_general(q_scr[...], k, (((1,), (1,)), ((), ())),
                        preferred_element_type=jnp.float32)

    # ---- online softmax update (kept in f32; v5e has no bf16 VPU/EUP) --------
    # TODO(synk): additive/boolean mask support (utils.masked_softmax with a
    # non-None mask) is not implemented -- mask=None path only.
    m_prev = m_scr[...]
    m_new = jnp.maximum(m_prev, s.max(axis=-1, keepdims=True))
    alpha = jnp.exp(m_prev - m_new)
    p = jnp.exp(s - m_new)
    l_scr[...] = alpha * l_scr[...] + p.sum(axis=-1, keepdims=True)
    acc_scr[...] = alpha * acc_scr[...] + jnp.dot(
        p, v, preferred_element_type=jnp.float32)
    m_scr[...] = m_new

    # ---- per-head finalize: fold the head merge into the Wo accumulation -----
    @pl.when(ki == nk - 1)
    def _():
        attn = acc_scr[...] * pl.reciprocal(l_scr[...], approx=True)  # (tq, hd)
        o_scr[...] += jnp.dot(attn, wo_ref[...],
                              preferred_element_type=jnp.float32)     # (tq, D)

    # ---- last head & last KV tile: add bias and store -------------------------
    @pl.when(jnp.logical_and(h == nh - 1, ki == nk - 1))
    def _():
        out_ref[...] = (o_scr[...] + bo_ref[...]).astype(out_ref.dtype)


def _pick_tile(l: int, target: int = 128) -> int:
    """Largest multiple-of-8 divisor of l that is <= target (else full l)."""
    if l <= target:
        return l
    for t in range(target, 7, -8):
        if l % t == 0:
            return t
    return l


def multihead_attention(x, wq, wk, wv, wo, bo, *, n_heads: int,
                        q_tile=None, kv_tile=None):
    """x: (N, L, D_in); wq/wk/wv: (D_in, KD); wo: (KD, D_in); bo: (1, D_in) or (D_in,)."""
    n, l, d_in = x.shape
    kd = wq.shape[1]
    assert kd % n_heads == 0, "key dimension must be divisible by n_heads"
    hd = kd // n_heads

    # Tile sizes: ~128 keeps the (tq, tk) score tile + accumulators well inside
    # the 32 MiB scoped VMEM budget on every generation (incl. v7x's 64 MiB phys).
    tq = q_tile or _pick_tile(l)
    tk = kv_tile or _pick_tile(l)
    assert l % tq == 0 and l % tk == 0
    n_q, n_kv = l // tq, l // tk

    # Host-side (XLA) relayout of the weights into per-head blocks -- done once
    # outside the kernel so the kernel never slices narrow lane ranges.
    wq_h = wq.reshape(d_in, n_heads, hd).transpose(1, 0, 2)    # (H, D_in, hd)
    wk_h = wk.reshape(d_in, n_heads, hd).transpose(1, 0, 2)    # (H, D_in, hd)
    wv_h = wv.reshape(d_in, n_heads, hd).transpose(1, 0, 2)    # (H, D_in, hd)
    wo_h = wo.reshape(n_heads, hd, d_in)                       # (H, hd, D_in)
    bo2 = bo.reshape(1, d_in)

    kernel = partial(_mha_kernel, inv_kdim=1.0 / math.sqrt(hd))
    sq = pl.Squeezed()

    return pl.pallas_call(
        kernel,
        out_shape=jax.ShapeDtypeStruct((n, l, d_in), x.dtype),
        grid_spec=pltpu.PrefetchScalarGridSpec(
            num_scalar_prefetch=0,
            grid=(n, n_q, n_heads, n_kv),
            in_specs=[
                # x rows feeding Q (constant across h, ki -> DMA'd once per (b,qi))
                pl.BlockSpec((sq, tq, d_in), lambda b, qi, h, ki: (b, qi, 0)),
                # x rows feeding K/V for this KV tile
                pl.BlockSpec((sq, tk, d_in), lambda b, qi, h, ki: (b, ki, 0)),
                # per-head weight blocks (selected via the head grid axis)
                pl.BlockSpec((sq, d_in, hd), lambda b, qi, h, ki: (h, 0, 0)),
                pl.BlockSpec((sq, d_in, hd), lambda b, qi, h, ki: (h, 0, 0)),
                pl.BlockSpec((sq, d_in, hd), lambda b, qi, h, ki: (h, 0, 0)),
                pl.BlockSpec((sq, hd, d_in), lambda b, qi, h, ki: (h, 0, 0)),
                # output-projection bias
                pl.BlockSpec((1, d_in), lambda b, qi, h, ki: (0, 0)),
            ],
            out_specs=pl.BlockSpec((sq, tq, d_in),
                                   lambda b, qi, h, ki: (b, qi, 0)),
            scratch_shapes=[
                pltpu.VMEM((tq, hd), jnp.float32),     # scaled Q (current head)
                pltpu.VMEM((tq, 1), jnp.float32),      # running max
                pltpu.VMEM((tq, 1), jnp.float32),      # running denominator
                pltpu.VMEM((tq, hd), jnp.float32),     # running P@V accumulator
                pltpu.VMEM((tq, d_in), jnp.float32),   # fused Wo accumulator
            ],
        ),
        compiler_params=pltpu.CompilerParams(
            # batch & q-tile are independent; head & kv-tile revisit the same
            # output block (reduction), so they must stay "arbitrary".
            dimension_semantics=("parallel", "parallel", "arbitrary", "arbitrary"),
        ),
    )(x, x, wq_h, wk_h, wv_h, wo_h, bo2)


def _reference(x, wq, wk, wv, wo, bo, *, n_heads: int):
    """Pure-JAX reference mirroring the PyTorch forward (mask=None)."""
    n, l, _ = x.shape
    kd = wq.shape[1]
    k_dim = kd // n_heads
    inv = 1.0 / math.sqrt(k_dim)

    def split_heads(t):
        return t.reshape(n, l, n_heads, k_dim).transpose(0, 2, 1, 3)

    q = split_heads(x @ wq)
    k = split_heads(x @ wk)
    v = split_heads(x @ wv)
    a = jnp.einsum("nhlk,nhmk->nhlm", q, k) * inv
    w = jax.nn.softmax(a, axis=-1)
    attn = jnp.einsum("nhlm,nhmk->nhlk", w, v)
    attn = attn.transpose(0, 2, 1, 3).reshape(n, l, kd)
    return attn @ wo + bo.reshape(1, kd // n_heads * 0 + wo.shape[1])


if __name__ == "__main__":
    # Small shapes consistent with the module: batch=2, seq=8, in_dim=32,
    # key_dim defaults to in_dim, n_heads=8 -> head_dim=4.
    N, L, D_IN = 2, 8, 32
    N_HEADS = 8
    KEY_DIM = D_IN

    key = jax.random.PRNGKey(0)
    kx, kq, kk, kv, ko, kb = jax.random.split(key, 6)

    x = jax.random.normal(kx, (N, L, D_IN), dtype=jnp.float32)

    # nn.Linear weights are (out, in); store pre-transposed as (in, out).
    scale_in = 1.0 / math.sqrt(D_IN)
    scale_kd = 1.0 / math.sqrt(KEY_DIM)
    wq = jax.random.uniform(kq, (D_IN, KEY_DIM), jnp.float32, -scale_in, scale_in)
    wk = jax.random.uniform(kk, (D_IN, KEY_DIM), jnp.float32, -scale_in, scale_in)
    wv = jax.random.uniform(kv, (D_IN, KEY_DIM), jnp.float32, -scale_in, scale_in)
    wo = jax.random.uniform(ko, (KEY_DIM, D_IN), jnp.float32, -scale_kd, scale_kd)
    bo = jax.random.uniform(kb, (1, D_IN), jnp.float32, -scale_kd, scale_kd)

    out = multihead_attention(x, wq, wk, wv, wo, bo, n_heads=N_HEADS)
    out = jax.block_until_ready(out)

    ref = _reference(x, wq, wk, wv, wo, bo, n_heads=N_HEADS)
    # Tolerance loosened vs the exact-reciprocal version because the softmax
    # denominator uses the EUP approx reciprocal (rel. err ~1e-4).
    np.testing.assert_allclose(np.asarray(out), np.asarray(ref),
                               rtol=2e-3, atol=2e-3)

    print("KERNEL_OK")
</pallas_src>

<mosaic_0001>
module attributes {stable_mosaic.version = 11 : i64} {
  func.func @_mha_kernel(%arg0: i32, %arg1: i32, %arg2: i32, %arg3: i32, %arg4: memref<1x8x32xf32, #tpu.memory_space<vmem>>, %arg5: memref<1x8x32xf32, #tpu.memory_space<vmem>>, %arg6: memref<1x32x4xf32, #tpu.memory_space<vmem>>, %arg7: memref<1x32x4xf32, #tpu.memory_space<vmem>>, %arg8: memref<1x32x4xf32, #tpu.memory_space<vmem>>, %arg9: memref<1x4x32xf32, #tpu.memory_space<vmem>>, %arg10: memref<1x32xf32, #tpu.memory_space<vmem>>, %arg11: memref<1x8x32xf32, #tpu.memory_space<vmem>>, %arg12: memref<8x4xf32, #tpu.memory_space<vmem>>, %arg13: memref<8x1xf32, #tpu.memory_space<vmem>>, %arg14: memref<8x1xf32, #tpu.memory_space<vmem>>, %arg15: memref<8x4xf32, #tpu.memory_space<vmem>>, %arg16: memref<8x32xf32, #tpu.memory_space<vmem>>) attributes {dimension_semantics = [#tpu.dimension_semantics<parallel>, #tpu.dimension_semantics<parallel>, #tpu.dimension_semantics<arbitrary>, #tpu.dimension_semantics<arbitrary>], iteration_bounds = array<i64: 2, 1, 8, 1>, scalar_prefetch = 0 : i64, scratch_operands = 5 : i64, tpu.core_type = #tpu.core_type<tc>, window_params = [{transform_indices = @transform_0, window_bounds = array<i64: 1, 8, 32>}, {transform_indices = @transform_1, window_bounds = array<i64: 1, 8, 32>}, {transform_indices = @transform_2, window_bounds = array<i64: 1, 32, 4>}, {transform_indices = @transform_3, window_bounds = array<i64: 1, 32, 4>}, {transform_indices = @transform_4, window_bounds = array<i64: 1, 32, 4>}, {transform_indices = @transform_5, window_bounds = array<i64: 1, 4, 32>}, {pipeline_mode = #tpu.pipeline_mode<synchronous>, transform_indices = @transform_6, window_bounds = array<i64: 1, 32>}, {transform_indices = @transform_7, window_bounds = array<i64: 1, 8, 32>}]} {
    %c0_i32 = arith.constant 0 : i32
    %0 = arith.cmpi eq, %arg2, %c0_i32 : i32
    %c0_i32_0 = arith.constant 0 : i32
    %1 = arith.cmpi eq, %arg3, %c0_i32_0 : i32
    %2 = arith.andi %0, %1 : i1
    %3 = arith.extui %2 : i1 to i32
    %c0_i32_1 = arith.constant 0 : i32
    %4 = arith.cmpi ne, %3, %c0_i32_1 : i32
    scf.if %4 {
      %cst_38 = arith.constant 0.000000e+00 : f32
      %50 = vector.broadcast %cst_38 : f32 to vector<8x32xf32>
      %c0_39 = arith.constant 0 : index
      %c0_40 = arith.constant 0 : index
      %51 = vector.load %arg16[%c0_39, %c0_40] : memref<8x32xf32, #tpu.memory_space<vmem>>, vector<8x32xf32>
      tpu.vector_store %arg16[%c0_39, %c0_40], %50 {strides = array<i32>} : memref<8x32xf32, #tpu.memory_space<vmem>>, vector<8x32xf32>,
    } else {
    }
    %c0_i32_2 = arith.constant 0 : i32
    %5 = arith.cmpi eq, %arg3, %c0_i32_2 : i32
    %6 = arith.extui %5 : i1 to i32
    %c0_i32_3 = arith.constant 0 : i32
    %7 = arith.cmpi ne, %6, %c0_i32_3 : i32
    scf.if %7 {
      %c0_38 = arith.constant 0 : index
      %c0_39 = arith.constant 0 : index
      %c0_40 = arith.constant 0 : index
      %50 = vector.load %arg4[%c0_38, %c0_39, %c0_40] : memref<1x8x32xf32, #tpu.memory_space<vmem>>, vector<1x8x32xf32>
      %51 = vector.shape_cast %50 : vector<1x8x32xf32> to vector<8x32xf32>
      %c0_41 = arith.constant 0 : index
      %c0_42 = arith.constant 0 : index
      %c0_43 = arith.constant 0 : index
      %52 = vector.load %arg6[%c0_41, %c0_42, %c0_43] : memref<1x32x4xf32, #tpu.memory_space<vmem>>, vector<1x32x4xf32>
      %53 = vector.shape_cast %52 : vector<1x32x4xf32> to vector<32x4xf32>
      %cst_44 = arith.constant dense<0.000000e+00> : vector<8x4xf32>
      %54 = tpu.matmul %51, %53, %cst_44 {dimension_numbers = #tpu.dot_dimension_numbers<[1], [0], [0], [1], [0, 0, 1, 1], [], []>} : vector<8x32xf32>, vector<32x4xf32>, vector<8x4xf32> -> vector<8x4xf32>
      %cst_45 = arith.constant 5.000000e-01 : f32
      %55 = vector.broadcast %cst_45 : f32 to vector<8x4xf32>
      %56 = arith.mulf %54, %55 : vector<8x4xf32>
      %c0_46 = arith.constant 0 : index
      %c0_47 = arith.constant 0 : index
      %57 = vector.load %arg12[%c0_46, %c0_47] : memref<8x4xf32, #tpu.memory_space<vmem>>, vector<8x4xf32>
      tpu.vector_store %arg12[%c0_46, %c0_47], %56 {strides = array<i32>} : memref<8x4xf32, #tpu.memory_space<vmem>>, vector<8x4xf32>,
      %cst_48 = arith.constant 0xFF800000 : f32
      %58 = vector.broadcast %cst_48 : f32 to vector<8x1xf32>
      %c0_49 = arith.constant 0 : index
      %c0_50 = arith.constant 0 : index
      %59 = vector.load %arg13[%c0_49, %c0_50] : memref<8x1xf32, #tpu.memory_space<vmem>>, vector<8x1xf32>
      tpu.vector_store %arg13[%c0_49, %c0_50], %58 {strides = array<i32>} : memref<8x1xf32, #tpu.memory_space<vmem>>, vector<8x1xf32>,
      %cst_51 = arith.constant 0.000000e+00 : f32
      %60 = vector.broadcast %cst_51 : f32 to vector<8x1xf32>
      %c0_52 = arith.constant 0 : index
      %c0_53 = arith.constant 0 : index
      %61 = vector.load %arg14[%c0_52, %c0_53] : memref<8x1xf32, #tpu.memory_space<vmem>>, vector<8x1xf32>
      tpu.vector_store %arg14[%c0_52, %c0_53], %60 {strides = array<i32>} : memref<8x1xf32, #tpu.memory_space<vmem>>, vector<8x1xf32>,
      %cst_54 = arith.constant 0.000000e+00 : f32
      %62 = vector.broadcast %cst_54 : f32 to vector<8x4xf32>
      %c0_55 = arith.constant 0 : index
      %c0_56 = arith.constant 0 : index
      %63 = vector.load %arg15[%c0_55, %c0_56] : memref<8x4xf32, #tpu.memory_space<vmem>>, vector<8x4xf32>
      tpu.vector_store %arg15[%c0_55, %c0_56], %62 {strides = array<i32>} : memref<8x4xf32, #tpu.memory_space<vmem>>, vector<8x4xf32>,
    } else {
    }
    %c0 = arith.constant 0 : index
    %c0_4 = arith.constant 0 : index
    %c0_5 = arith.constant 0 : index
    %8 = vector.load %arg5[%c0, %c0_4, %c0_5] : memref<1x8x32xf32, #tpu.memory_space<vmem>>, vector<1x8x32xf32>
    %9 = vector.shape_cast %8 : vector<1x8x32xf32> to vector<8x32xf32>
    %c0_6 = arith.constant 0 : index
    %c0_7 = arith.constant 0 : index
    %c0_8 = arith.constant 0 : index
    %10 = vector.load %arg7[%c0_6, %c0_7, %c0_8] : memref<1x32x4xf32, #tpu.memory_space<vmem>>, vector<1x32x4xf32>
    %11 = vector.shape_cast %10 : vector<1x32x4xf32> to vector<32x4xf32>
    %cst = arith.constant dense<0.000000e+00> : vector<8x4xf32>
    %12 = tpu.matmul %9, %11, %cst {dimension_numbers = #tpu.dot_dimension_numbers<[1], [0], [0], [1], [0, 0, 1, 1], [], []>} : vector<8x32xf32>, vector<32x4xf32>, vector<8x4xf32> -> vector<8x4xf32>
    %c0_9 = arith.constant 0 : index
    %c0_10 = arith.constant 0 : index
    %c0_11 = arith.constant 0 : index
    %13 = vector.load %arg5[%c0_9, %c0_10, %c0_11] : memref<1x8x32xf32, #tpu.memory_space<vmem>>, vector<1x8x32xf32>
    %14 = vector.shape_cast %13 : vector<1x8x32xf32> to vector<8x32xf32>
    %c0_12 = arith.constant 0 : index
    %c0_13 = arith.constant 0 : index
    %c0_14 = arith.constant 0 : index
    %15 = vector.load %arg8[%c0_12, %c0_13, %c0_14] : memref<1x32x4xf32, #tpu.memory_space<vmem>>, vector<1x32x4xf32>
    %16 = vector.shape_cast %15 : vector<1x32x4xf32> to vector<32x4xf32>
    %cst_15 = arith.constant dense<0.000000e+00> : vector<8x4xf32>
    %17 = tpu.matmul %14, %16, %cst_15 {dimension_numbers = #tpu.dot_dimension_numbers<[1], [0], [0], [1], [0, 0, 1, 1], [], []>} : vector<8x32xf32>, vector<32x4xf32>, vector<8x4xf32> -> vector<8x4xf32>
    %c0_16 = arith.constant 0 : index
    %c0_17 = arith.constant 0 : index
    %18 = vector.load %arg12[%c0_16, %c0_17] : memref<8x4xf32, #tpu.memory_space<vmem>>, vector<8x4xf32>
    %cst_18 = arith.constant dense<0.000000e+00> : vector<8x8xf32>
    %19 = tpu.matmul %18, %12, %cst_18 {dimension_numbers = #tpu.dot_dimension_numbers<[1], [1], [0], [0], [0, 0, 1, 0], [], []>} : vector<8x4xf32>, vector<8x4xf32>, vector<8x8xf32> -> vector<8x8xf32>
    %c0_19 = arith.constant 0 : index
    %c0_20 = arith.constant 0 : index
    %20 = vector.load %arg13[%c0_19, %c0_20] : memref<8x1xf32, #tpu.memory_space<vmem>>, vector<8x1xf32>
    %cst_21 = arith.constant dense<0xFF800000> : vector<8xf32>
    %21 = vector.multi_reduction <maximumf>, %19, %cst_21 [1] : vector<8x8xf32> to vector<8xf32>
    %22 = vector.shape_cast %21 : vector<8xf32> to vector<8x1xf32>
    %23 = arith.maximumf %20, %22 : vector<8x1xf32>
    %24 = arith.subf %20, %23 : vector<8x1xf32>
    %25 = math.exp %24 : vector<8x1xf32>
    %26 = vector.broadcast %23 : vector<8x1xf32> to vector<8x8xf32>
    %27 = arith.subf %19, %26 : vector<8x8xf32>
    %28 = math.exp %27 : vector<8x8xf32>
    %c0_22 = arith.constant 0 : index
    %c0_23 = arith.constant 0 : index
    %29 = vector.load %arg14[%c0_22, %c0_23] : memref<8x1xf32, #tpu.memory_space<vmem>>, vector<8x1xf32>
    %30 = arith.mulf %25, %29 : vector<8x1xf32>
    %cst_24 = arith.constant dense<0.000000e+00> : vector<8xf32>
    %31 = vector.multi_reduction <add>, %28, %cst_24 [1] : vector<8x8xf32> to vector<8xf32>
    %32 = vector.shape_cast %31 : vector<8xf32> to vector<8x1xf32>
    %33 = arith.addf %30, %32 : vector<8x1xf32>
    %c0_25 = arith.constant 0 : index
    %c0_26 = arith.constant 0 : index
    %34 = vector.load %arg14[%c0_25, %c0_26] : memref<8x1xf32, #tpu.memory_space<vmem>>, vector<8x1xf32>
    tpu.vector_store %arg14[%c0_25, %c0_26], %33 {strides = array<i32>} : memref<8x1xf32, #tpu.memory_space<vmem>>, vector<8x1xf32>,
    %c0_27 = arith.constant 0 : index
    %c0_28 = arith.constant 0 : index
    %35 = vector.load %arg15[%c0_27, %c0_28] : memref<8x4xf32, #tpu.memory_space<vmem>>, vector<8x4xf32>
    %36 = vector.broadcast %25 : vector<8x1xf32> to vector<8x4xf32>
    %37 = arith.mulf %36, %35 : vector<8x4xf32>
    %cst_29 = arith.constant dense<0.000000e+00> : vector<8x4xf32>
    %38 = tpu.matmul %28, %17, %cst_29 {dimension_numbers = #tpu.dot_dimension_numbers<[1], [0], [0], [1], [0, 0, 1, 1], [], []>} : vector<8x8xf32>, vector<8x4xf32>, vector<8x4xf32> -> vector<8x4xf32>
    %39 = arith.addf %37, %38 : vector<8x4xf32>
    %c0_30 = arith.constant 0 : index
    %c0_31 = arith.constant 0 : index
    %40 = vector.load %arg15[%c0_30, %c0_31] : memref<8x4xf32, #tpu.memory_space<vmem>>, vector<8x4xf32>
    tpu.vector_store %arg15[%c0_30, %c0_31], %39 {strides = array<i32>} : memref<8x4xf32, #tpu.memory_space<vmem>>, vector<8x4xf32>,
    %c0_32 = arith.constant 0 : index
    %c0_33 = arith.constant 0 : index
    %41 = vector.load %arg13[%c0_32, %c0_33] : memref<8x1xf32, #tpu.memory_space<vmem>>, vector<8x1xf32>
    tpu.vector_store %arg13[%c0_32, %c0_33], %23 {strides = array<i32>} : memref<8x1xf32, #tpu.memory_space<vmem>>, vector<8x1xf32>,
    %c0_i32_34 = arith.constant 0 : i32
    %42 = arith.cmpi eq, %arg3, %c0_i32_34 : i32
    %43 = arith.extui %42 : i1 to i32
    %c0_i32_35 = arith.constant 0 : i32
    %44 = arith.cmpi ne, %43, %c0_i32_35 : i32
    scf.if %44 {
      %c0_38 = arith.constant 0 : index
      %c0_39 = arith.constant 0 : index
      %50 = vector.load %arg15[%c0_38, %c0_39] : memref<8x4xf32, #tpu.memory_space<vmem>>, vector<8x4xf32>
      %c0_40 = arith.constant 0 : index
      %c0_41 = arith.constant 0 : index
      %51 = vector.load %arg14[%c0_40, %c0_41] : memref<8x1xf32, #tpu.memory_space<vmem>>, vector<8x1xf32>
      %52 = tpu.reciprocal %51 {approx = true} : vector<8x1xf32> -> vector<8x1xf32>
      %53 = vector.broadcast %52 : vector<8x1xf32> to vector<8x4xf32>
      %54 = arith.mulf %50, %53 : vector<8x4xf32>
      %c0_42 = arith.constant 0 : index
      %c0_43 = arith.constant 0 : index
      %55 = vector.load %arg16[%c0_42, %c0_43] : memref<8x32xf32, #tpu.memory_space<vmem>>, vector<8x32xf32>
      %c0_44 = arith.constant 0 : index
      %c0_45 = arith.constant 0 : index
      %c0_46 = arith.constant 0 : index
      %56 = vector.load %arg9[%c0_44, %c0_45, %c0_46] : memref<1x4x32xf32, #tpu.memory_space<vmem>>, vector<1x4x32xf32>
      %57 = vector.shape_cast %56 : vector<1x4x32xf32> to vector<4x32xf32>
      %cst_47 = arith.constant dense<0.000000e+00> : vector<8x32xf32>
      %58 = tpu.matmul %54, %57, %cst_47 {dimension_numbers = #tpu.dot_dimension_numbers<[1], [0], [0], [1], [0, 0, 1, 1], [], []>} : vector<8x4xf32>, vector<4x32xf32>, vector<8x32xf32> -> vector<8x32xf32>
      %59 = arith.addf %55, %58 : vector<8x32xf32>
      %c0_48 = arith.constant 0 : index
      %c0_49 = arith.constant 0 : index
      %60 = vector.load %arg16[%c0_48, %c0_49] : memref<8x32xf32, #tpu.memory_space<vmem>>, vector<8x32xf32>
      tpu.vector_store %arg16[%c0_48, %c0_49], %59 {strides = array<i32>} : memref<8x32xf32, #tpu.memory_space<vmem>>, vector<8x32xf32>,
    } else {
    }
    %c7_i32 = arith.constant 7 : i32
    %45 = arith.cmpi eq, %arg2, %c7_i32 : i32
    %c0_i32_36 = arith.constant 0 : i32
    %46 = arith.cmpi eq, %arg3, %c0_i32_36 : i32
    %47 = arith.andi %45, %46 : i1
    %48 = arith.extui %47 : i1 to i32
    %c0_i32_37 = arith.constant 0 : i32
    %49 = arith.cmpi ne, %48, %c0_i32_37 : i32
    scf.if %49 {
      %c0_38 = arith.constant 0 : index
      %c0_39 = arith.constant 0 : index
      %50 = vector.load %arg16[%c0_38, %c0_39] : memref<8x32xf32, #tpu.memory_space<vmem>>, vector<8x32xf32>
      %c0_40 = arith.constant 0 : index
      %c0_41 = arith.constant 0 : index
      %51 = vector.load %arg10[%c0_40, %c0_41] : memref<1x32xf32, #tpu.memory_space<vmem>>, vector<1x32xf32>
      %52 = vector.broadcast %51 : vector<1x32xf32> to vector<8x32xf32>
      %53 = arith.addf %50, %52 : vector<8x32xf32>
      %c0_42 = arith.constant 0 : index
      %c0_43 = arith.constant 0 : index
      %c0_44 = arith.constant 0 : index
      %54 = vector.load %arg11[%c0_42, %c0_43, %c0_44] : memref<1x8x32xf32, #tpu.memory_space<vmem>>, vector<1x8x32xf32>
      %55 = vector.shape_cast %54 : vector<1x8x32xf32> to vector<8x32xf32>
      %56 = vector.shape_cast %53 : vector<8x32xf32> to vector<1x8x32xf32>
      tpu.vector_store %arg11[%c0_42, %c0_43, %c0_44], %56 {strides = array<i32>} : memref<1x8x32xf32, #tpu.memory_space<vmem>>, vector<1x8x32xf32>,
    } else {
    }
    return
  }
  func.func @transform_0(%arg0: i32, %arg1: i32, %arg2: i32, %arg3: i32) -> (i32, i32, i32) {
    %c0_i32 = arith.constant 0 : i32
    %c0_i32_0 = arith.constant 0 : i32
    return %arg0, %arg1, %c0_i32 : i32, i32, i32
  }
  func.func @transform_1(%arg0: i32, %arg1: i32, %arg2: i32, %arg3: i32) -> (i32, i32, i32) {
    %c0_i32 = arith.constant 0 : i32
    %c0_i32_0 = arith.constant 0 : i32
    return %arg0, %arg3, %c0_i32 : i32, i32, i32
  }
  func.func @transform_2(%arg0: i32, %arg1: i32, %arg2: i32, %arg3: i32) -> (i32, i32, i32) {
    %c0_i32 = arith.constant 0 : i32
    %c0_i32_0 = arith.constant 0 : i32
    %c0_i32_1 = arith.constant 0 : i32
    return %arg2, %c0_i32, %c0_i32_0 : i32, i32, i32
  }
  func.func @transform_3(%arg0: i32, %arg1: i32, %arg2: i32, %arg3: i32) -> (i32, i32, i32) {
    %c0_i32 = arith.constant 0 : i32
    %c0_i32_0 = arith.constant 0 : i32
    %c0_i32_1 = arith.constant 0 : i32
    return %arg2, %c0_i32, %c0_i32_0 : i32, i32, i32
  }
  func.func @transform_4(%arg0: i32, %arg1: i32, %arg2: i32, %arg3: i32) -> (i32, i32, i32) {
    %c0_i32 = arith.constant 0 : i32
    %c0_i32_0 = arith.constant 0 : i32
    %c0_i32_1 = arith.constant 0 : i32
    return %arg2, %c0_i32, %c0_i32_0 : i32, i32, i32
  }
  func.func @transform_5(%arg0: i32, %arg1: i32, %arg2: i32, %arg3: i32) -> (i32, i32, i32) {
    %c0_i32 = arith.constant 0 : i32
    %c0_i32_0 = arith.constant 0 : i32
    %c0_i32_1 = arith.constant 0 : i32
    return %arg2, %c0_i32, %c0_i32_0 : i32, i32, i32
  }
  func.func @transform_6(%arg0: i32, %arg1: i32, %arg2: i32, %arg3: i32) -> (i32, i32) {
    %c0_i32 = arith.constant 0 : i32
    %c0_i32_0 = arith.constant 0 : i32
    %c0_i32_1 = arith.constant 0 : i32
    return %c0_i32, %c0_i32_0 : i32, i32
  }
  func.func @transform_7(%arg0: i32, %arg1: i32, %arg2: i32, %arg3: i32) -> (i32, i32, i32) {
    %c0_i32 = arith.constant 0 : i32
    %c0_i32_0 = arith.constant 0 : i32
    return %arg0, %arg1, %c0_i32 : i32, i32, i32
  }
}

</mosaic_0001>

<bundles_post_ra>
// kernel: tpu_custom_call.1
= control target key start
LH: loop header
LB: loop body
LE: loop exit
PB: predicated region body
PF: predicated region fallthrough
CT: control target
= control target key end

     0   :  { %s1668_s0 = inlined_call_operand.vmem [shape: f32[2,8,32], index: 0, kind: input, shape index: {}]   ;;  %s1669_s1 = inlined_call_operand.vmem [shape: f32[2,8,32], index: 1, kind: input, shape index: {}]   ;;  %s1670_s2 = inlined_call_operand.vmem [shape: f32[8,32,4], index: 2, kind: input, shape index: {}]   ;;  %s1671_s3 = inlined_call_operand.vmem [shape: f32[8,32,4], index: 3, kind: input, shape index: {}]   ;;  %s1672_s4 = inlined_call_operand.vmem [shape: f32[8,32,4], index: 4, kind: input, shape index: {}]   ;;  %s1673_s5 = inlined_call_operand.vmem [shape: f32[8,4,32], index: 5, kind: input, shape index: {}]   ;;  %s1674_s6 = inlined_call_operand.vmem [shape: f32[1,32], index: 6, kind: input, shape index: {}]   ;;  %s1675_s7 = inlined_call_operand.hbm [shape: f32[2,8,32], index: 7, kind: output, shape index: {}]  }
   0x1   :  { %1683 = sst [smem:[#allocation18_spill]] %s1668_s0 }
   0x2   :  { %12 = vsyncpa [#allocation8], 0 }
   0x3   :  { %14 = vsyncpa [#allocation8 + $0x1], 0  ;;  %s1448_s24 = smov 0   ;;  %s1450_s25 = smov 0  }
   0x4   :  { %s1452_s26 = smov 0   ;;  %s1454_s27 = smov 0  }
   0x5   :  { %s1456_s28 = smov 0   ;;  %s1458_s29 = smov 0  }
   0x6   :  { %s1460_s30 = smov 0   ;;  %s1462_s8 = smov 0  }
   0x7 LB: > { %1684 = sst [smem:[#allocation10_spill]] %s1372_s24  ;;  %s1120_s9 = sadd.s32 4294967295, %s1400_s8   ;;  %s1400_s8 = sphi %s1462_s8, %s20_s8   ;;  %s1396_s30 = sphi %s1460_s30, %s1703_s30   ;;  %s1392_s29 = sphi %s1458_s29, %s1702_s29   ;;  %s1388_s28 = sphi %s1456_s28, %s1701_s28   ;;  %s1384_s27 = sphi %s1454_s27, %s1707_s27   ;;  %s1380_s26 = sphi %s1452_s26, %s1706_s26   ;;  %s1376_s25 = sphi %s1450_s25, %s1705_s25   ;;  %s1372_s24 = sphi %s1448_s24, %s1704_s24  }
   0x8   : > { %1685 = sst [smem:[#allocation11_spill]] %s1380_s26  ;;  %s1121_s10 = sadd.s32 4294967294, %s1400_s8  }
   0x9   : > { %1686 = sst [smem:[#allocation12_spill]] %s1392_s29  ;;  %s38_s11 = sadd.s32 1, %s1392_s29 }
   0xa   : > { %1687 = sst [smem:[#allocation13_spill]] %s1396_s30  ;;  %p40_p0 = scmp.ge.s32.totalorder %s38_s11, 8 }
   0xb   : > { %s46_s12 = sadd.s32 1, %s1396_s30  ;;  %p246_p1 = scmp.ne.s32.totalorder %s1380_s26, %s1376_s25 }
   0xc   : > { %p247_p2 = scmp.eq.s32.totalorder %s1120_s9, 15  ;;  %s1709_s11 = smov (%p40_p0, %s38_s11), 0 }
   0xd   : > { %1688 = sst [smem:[#allocation14_spill]] %s1709_s11  ;;  %s1711_s12 = smov (!%p40_p0, %s46_s12), %s1396_s30 }
   0xe   : > { %p1497_p3 = por %p247_p2, %p246_p1  ;;  %p252_p4 = scmp.ne.s32.totalorder %s1376_s25, %s1372_s24 }
   0xf   : > { %p48_p5 = scmp.ge.s32.totalorder %s1711_s12, 2  ;;  %p253_p6 = scmp.eq.s32.totalorder %s1121_s10, 15 }
  0x10   : > { %p1124_p7 = scmp.ge.s32.totalorder %s1400_s8, 1  ;;  %p325_p8 = scmp.lt.s32.totalorder %s1400_s8, 17 }
  0x11   : > { %s1713_s12 = smov (%p48_p5, %s1711_s12), 0  ;;  %p1507_p9 = por %p253_p6, %p252_p4 }
  0x12   : > { %1690 = sst [smem:[#allocation15_spill]] %s1713_s12  ;;  %p326_p10 = pnand %p1124_p7, %p325_p8 }
  0x13   : > { %s1691_s14 = scalar_select %p1507_p9, 1, 0 }
  0x14   : > { %s231_s15 = ssub.s32 %s1396_s30, %s1713_s12  ;;  %s236_s16 = sadd.s32 1, %s1380_s26 }
  0x15   : > { %1692 = sst [smem:[#allocation16_spill]] %s1691_s14  ;;  %p234_p11 = scmp.eq.s32.totalorder %s231_s15, 0 }
  0x16   : > { %329 = sbr.rel (%p326_p10) target bundleno = 1246 (0x4de), region = 48  ;;  %s1678_s18 = sand.u32 (!%p326_p10), 1, %s1376_s25  }
  0x17   : > { %s1515_s17 = scalar_select %p234_p11, %s1380_s26, %s236_s16  }
  0x18   : > { %p385_p12 = scmp.lt.s32.totalorder (!%p326_p10), %s1388_s28, 1  ;;  %s1521_s19 = sshll.u32 (!%p326_p10), %s1678_s18, 3 }
  0x19   : > { %1693 = sst [smem:[#allocation17_spill]] %s1515_s17  ;;  %p399_p13 = scmp.lt.s32.totalorder (!%p326_p10), %s1384_s27, 7 }
  0x1a   : > { %p418_p0 = scmp.eq.s32.totalorder (!%p326_p10), %s1384_s27, 0  ;;  %s1694_s0 = sld [smem:[#allocation18_spill]] (!%p326_p10) }
  0x1b   : > { %s386_s20 = scalar_select %p385_p12, %s1388_s28, 1  ;;  %vm424_vm0 = vcmask (%p418_p0), 261120   ;;  %v1402_v0 = vmov (%p418_p0), 0.0  }
  0x1c   : > { %s400_s21 = scalar_select %p399_p13, %s1384_s27, 7  ;;  %425 = vst.msk [vmem:[#allocation6] sm:$0xff] (%p418_p0), %vm424_vm0, %v1402_v0 }
  0x1d   : > { %s1126_s22 = sshll.u32 %s386_s20, 3 }
  0x1e   : > { %s1535_s12 = scalar_lea.vmem %s1669_s1, %s1126_s22  ;;  %s1150_s11 = sshll.u32 %s400_s21, 5 }
  0x1f   : > { %s1134_s30 = sshll.u32 %s400_s21, 2  ;;  %s403_s17 = scalar_lea.vmem %s1670_s2, %s1150_s11 }
  0x20   : > { %s1530_s10 = scalar_lea.vmem %s1694_s0, %s1126_s22  ;;  %s1543_s20 = scalar_lea.vmem %s1671_s3, %s1150_s11 }
  0x21   : > { %s1548_s9 = scalar_lea.vmem %s1672_s4, %s1150_s11  ;;  %s1553_s22 = scalar_lea.vmem %s1673_s5, %s1134_s30 }
  0x22   : > { %s384_s21 = scalar_lea.vmem [#allocation7], %s1521_s19  ;;  %423 = sbr.rel (!%p418_p0) target bundleno = 39 (0x27), region = 52 }
  0x27 PF: > { %v433_v1 = vld [vmem:[%s403_s17 + $0x18] sm:$0xff]  ;;  %v1403_v2 = vmov 0.0   ;;  %v432_v3 = vld [vmem:[%s403_s17 + $0x10] sm:$0xff]  ;;  %v431_v6 = vld [vmem:[%s403_s17 + $0x8] sm:$0xff]  ;;  %vm1404_vm1 = vmmov 0   ;;  %vm434_vm2 = vcmask 261120  }
  0x28   : > { %1176 = vmatprep.subr.mxu0 %v1403_v2  ;;  %1187 = vmatprep.subr.mxu1 %v1403_v2  ;;  %v519_v4 = vld [vmem:[%s1543_s20 + $0x18] sm:$0xff]  ;;  %v518_v5 = vld [vmem:[%s1543_s20 + $0x10] sm:$0xff]  ;;  %v517_v7 = vld [vmem:[%s1543_s20 + $0x8] sm:$0xff]  ;;  %vm509_vm3 = vcmask 31744   ;;  %vm511_vm4 = vcmask 7168   ;;  %v1405_v20 = vmov -inf  }
  0x29   : > { %1177 = vmatpush3.msra.mxu0 %v433_v1  ;;  %1188 = vmatpush3.msra.mxu1 %v519_v4  ;;  %v430_v8 = vld [vmem:[%s403_s17] sm:$0xff]  ;;  %514 = vst.msk [vmem:[#allocation5] sm:$0xff] %vm509_vm3, %v1403_v2  ;;  %v597_v18 = vld [vmem:[%s1548_s9 + $0x18] sm:$0xff]  ;;  %v596_v19 = vld [vmem:[%s1548_s9 + $0x10] sm:$0xff]  ;;  %vm747_vm5 = vcmask 64512   ;;  %v1406_v26 = vmov 0  }
  0x2a   : > { %1178 = vmatprep.subr.mxu0 %v1403_v2  ;;  %1189 = vmatprep.subr.mxu1 %v1403_v2  ;;  %v429_v9 = vld [vmem:[%s1530_s10] sm:$0xff]  ;;  %512 = vst.msk [vmem:[#allocation3] sm:$0xff] %vm511_vm4, %v1405_v20  ;;  %513 = vst.msk [vmem:[#allocation4] sm:$0xff] %vm511_vm4, %v1403_v2  ;;  %v595_v21 = vld [vmem:[%s1548_s9 + $0x8] sm:$0xff]  ;;  %vm871_vm6 = vcmask 1043456   ;;  %p947_p1 = scmp.eq.s32.totalorder %s1384_s27, 7 }
  0x2b   : > { %1179 = vmatpush3.msra.mxu0 %v432_v3  ;;  %1184 = vmatprep.mubr.msk.f32.mxu0 %vm1404_vm1, %v1403_v2  ;;  %v516_v10 = vld [vmem:[%s1543_s20] sm:$0xff] }
  0x2c   : > { %1180 = vmatprep.subr.mxu0 %v1403_v2  ;;  %1190 = vmatpush3.msra.mxu1 %v518_v5  ;;  %v515_v11 = vld [vmem:[%s1535_s12] sm:$0xff] }
  0x2d   : > { %1181 = vmatpush3.msra.mxu0 %v431_v6  ;;  %1191 = vmatprep.subr.mxu1 %v1403_v2  ;;  %v594_v22 = vld [vmem:[%s1548_s9] sm:$0xff] }
  0x2e   : > { %1182 = vmatprep.subr.mxu0 %v1403_v2  ;;  %1192 = vmatpush3.msra.mxu1 %v517_v7  ;;  %v867_v40 = vld [vmem:[%s1553_s22] sm:$0xf] }
  0x2f   : > { %1183 = vmatpush3.msra.mxu0 %v430_v8  ;;  %1193 = vmatprep.subr.mxu1 %v1403_v2  ;;  %v866_v56 = vld [vmem:[#allocation6] sm:$0xff] }
  0x30   : > { %1185 = vmatmul.mubr.msk.f32.vlgmr.msra.gmra.mxu0 %vm434_vm2, %v429_v9  ;;  %1194 = vmatpush3.msra.mxu1 %v516_v10  ;;  %v771_v47 = vld [vmem:[#allocation5] sm:$0xff]  ;;  %v1145_v61 = vld [vmem:[%s1674_s6] ss:$0 sm:$0xff] (%p947_p1) }
  0x31   : > { %1195 = vmatprep.mubr.msk.f32.mxu1 %vm1404_vm1, %v1403_v2  ;;  %1209 = vmatprep.subr.mxu1 %v1403_v2  ;;  %v746_v27 = vld [vmem:[#allocation3] sm:$0xff]  ;;  %v763_v41 = vld [vmem:[#allocation4] sm:$0xff] }
  0x32   : > { %1196 = vmatmul.mubr.msk.f32.vlgmr.msra.gmra.mxu1 %vm434_vm2, %v515_v11  ;;  %1198 = vmatprep.subr.mxu0 %v1403_v2 }
  0x33   : > { %1211 = vmatprep.mubr.msk.f32.mxu1 %vm1404_vm1, %v1403_v2  ;;  %1206 = vmatprep.mubr.msk.f32.mxu0 %vm1404_vm1, %v1403_v2 }
  0x34   : > { %1199 = vmatpush3.msra.mxu0 %v597_v18  ;;  %1300 = vset.pattern.permute.xlu0 %v1406_v26 }
  0x35   : > { %1200 = vmatprep.subr.mxu0 %v1403_v2  ;;  %1301 = vset.pattern.permute.xlu1 %v1406_v26 }
  0x36   : > { %1201 = vmatpush3.msra.mxu0 %v596_v19 }
  0x37   : > { %1202 = vmatprep.subr.mxu0 %v1403_v2 }
  0x38   : > { %1203 = vmatpush3.msra.mxu0 %v595_v21 }
  0x39   : > { %1204 = vmatprep.subr.mxu0 %v1403_v2 }
  0x3a   : > { %1205 = vmatpush3.msra.mxu0 %v594_v22 }
  0x3b   : > { %1207 = vmatmul.mubr.msk.f32.vlgmr.msra.gmra.mxu0 %vm434_vm2, %v515_v11  ;;  %1219 = vmatprep.subr.mxu0 %v1403_v2 }
  0x3c   : > { %1221 = vmatprep.mubr.msk.f32.mxu0 %vm1404_vm1, %v1403_v2  ;;  %1220 = vmatpush3.msk.msra.mxu0 %vm871_vm6, %v867_v40 }
  0xf0   : > { %v504_v12 = vpop.f32.mrf.mxu0 }
  0xf1   : > { %v508_v13 = vmul.f32 0.5, %v504_v12 }
  0xf2   : > { %v1186_v14 = vpop.f32.mrf.mxu0  ;;  %v590_v15 = vpop.f32.mrf.mxu1 }
  0xf3   : > { %510 = vst.msk [vmem:[#allocation2] sm:$0xff] %vm509_vm3, %v508_v13  ;;  %1210 = vmatpush3.xpose.msk.msra.mxu1 %vm509_vm3, %v590_v15 }
  0xf4   : > { %v1197_v16 = vpop.f32.mrf.mxu1  ;;  %1214 = vmatprep.subr.mxu1 %v1403_v2 }
  0xfa   : > { %v668_v17 = vld [vmem:[#allocation2] sm:$0xff] }
  0xfb   : > { %1212 = vmatmul.mubr.msk.f32.vlgmr.msra.gmra.mxu1 %vm509_vm3, %v668_v17  ;;  %v664_v31 = vpop.f32.mrf.mxu0 }
  0xfc   : > { %1216 = vmatprep.mubr.msk.f32.mxu1 %vm1404_vm1, %v1403_v2  ;;  %1215 = vmatpush3.msra.mxu1 %v664_v31 }
  0xfd   : > { %v1208_v32 = vpop.f32.mrf.mxu0 }
 0x1bb   : > { %v742_v23 = vpop.f32.mrf.mxu1 }
 0x1bc   : > { %v748_v24 = vsel %vm747_vm5, %v742_v23, -inf }
 0x1bd   : > { %749 = vmax.xlane.f32.xlu0 %v748_v24  ;;  %v1213_v25 = vpop.f32.mrf.mxu1 }
 0x246   : > { %v750_v28 = vpop.xlane.xlu0 %749 }
 0x247   : > { %v751_v29 = vmax.f32 %v746_v27, %v750_v28 }
 0x249   : > { %v752_v30 = vsub.f32 %v746_v27, %v751_v29  ;;  %853 = vst.msk [vmem:[#allocation3] sm:$0xff] %vm511_vm4, %v751_v29  ;;  %757 = vperm.xlu0 %1300, %v751_v29  }
 0x24b   : > { %v753_v37 = vmul.f32 1.442695, %v752_v30 }
 0x2c4   : > { %v758_v33 = vpop.permute.xlu0 %757 }
 0x2c5   : > { %v760_v34 = vsub.f32 %v742_v23, %v758_v33 }
 0x2c7   : > { %v761_v35 = vmul.f32 1.442695, %v760_v34 }
 0x2c9   : > { %1302 = vpow2.f32 %v761_v35 }
 0x2ca   : > { %1304 = vpow2.f32 %v753_v37 }
 0x2d6   : > { %v1303_v36 = vpop.eup %1302 }
 0x2d7   : > { %1217 = vmatmul.mubr.msk.f32.vlgmr.msra.gmra.mxu1 %vm747_vm5, %v1303_v36  ;;  %v765_v38 = vsel %vm747_vm5, %v1303_v36, 0.0  ;;  %v1305_v39 = vpop.eup %1304 }
 0x2d8   : > { %766 = vadd.xlane.f32.xlu1 %v765_v38  ;;  %v764_v42 = vmul.f32 %v1305_v39, %v763_v41 }
 0x2e9   : > { %774 = vperm.xlu1 %1301, %v1305_v39  }
 0x361   : > { %v767_v43 = vpop.xlane.xlu1 %766 }
 0x362   : > { %v768_v44 = vadd.f32 %v767_v43, %v764_v42 }
 0x364   : > { %770 = vst.msk [vmem:[#allocation4] sm:$0xff] %vm511_vm4, %v768_v44 }
 0x365   : > { %v775_v48 = vpop.permute.xlu1 %774 }
 0x366   : > { %v777_v49 = vmul.f32 %v775_v48, %v771_v47 }
 0x36b   : > { %v858_v45 = vld [vmem:[#allocation4] sm:$0xff] }
 0x36c   : > { %1306 = vrcp.f32 %v858_v45 }
 0x379   : > { %v1307_v46 = vpop.eup %1306 }
 0x37a   : > { %862 = vperm.xlu1 %1301, %v1307_v46  }
 0x397   : > { %v847_v50 = vpop.f32.mrf.mxu1 }
 0x398   : > { %v851_v51 = vadd.f32 %v847_v50, %v777_v49 }
 0x399   : > { %v1218_v52 = vpop.f32.mrf.mxu1 }
 0x39a   : > { %852 = vst.msk [vmem:[#allocation5] sm:$0xff] %vm509_vm3, %v851_v51 }
 0x3a1   : > { %v857_v54 = vld [vmem:[#allocation5] sm:$0xff] }
 0x3f5   : > { %v863_v53 = vpop.permute.xlu1 %862 }
 0x3f6   : > { %v865_v55 = vmul.f32 %v863_v53, %v857_v54 }
 0x3f8   : > { %1222 = vmatmul.mubr.msk.f32.vlgmr.msra.gmra.mxu0 %vm509_vm3, %v865_v55 }
 0x4b7   : > { %951 = sbr.rel (!%p947_p1) target bundleno = 1222 (0x4c6), region = 64 }
 0x4b8   : > { %v941_v57 = vpop.f32.mrf.mxu0 }
 0x4b9   : > { %v945_v58 = vadd.f32 %v941_v57, %v866_v56 }
 0x4ba   : > { %v1223_v59 = vpop.f32.mrf.mxu0 }
 0x4bb   : > { %946 = vst.msk [vmem:[#allocation6] sm:$0xff] %vm434_vm2, %v945_v58 }
 0x4c2   : > { %v952_v60 = vld [vmem:[#allocation6] sm:$0xff] }
 0x4c3   : > { %v960_v62 = vadd.f32 %v1145_v61, %v952_v60 }
 0x4c5   : > { %961 = vst.msk [vmem:[%s384_s21] sm:$0xff] %vm434_vm2, %v960_v62 }
 0x4c6 PF: > { %s1147_s26 = sshll.u32 %s1388_s28, 7  ;;  %s977_s11 = sshll.u32 %s384_s21, 4  ;;  %s978_s11 = int_to_ptr.vmem [resolvable:$true] %s977_s11 }
 0x4c7   : > { %s975_s30 = scalar_lea.hbm %s1675_s7, %s1147_s26  ;;  %s1695_s12 = sand.u32 1, %s1376_s25  }
 0x4c8   : > { %s963_s14 = scalar_lea.sflag [#allocation8], %s1695_s12  ;;  %s1308_s17 = scalar_lea.vmem %s978_s11, 128 }
 0x4c9   : > { %p1309_p2 = scmp.ne.s32.totalorder %s978_s11, %s1308_s17  ;;  %s1407_s18 = smov [#allocation7]  }
 0x4ca   : > { %s1312_s10 = sshll.u32 %s1407_s18, 4  ;;  %s1313_s10 = int_to_ptr.vmem [resolvable:$false] %s1312_s10 }
 0x4cb   : > { %p1310_p4 = pnand %p1309_p2, %p1497_p3  ;;  %s1314_s16 = scalar_lea.vmem %s1313_s10, 256 }
 0x4cc   : > { %p1315_p6 = scmp.lt.s32.totalorder %s978_s11, %s1313_s10  ;;  %p1316_p7 = scmp.lt.s32.totalorder %s1314_s16, %s1308_s17 }
 0x4cd   : > { %p1311_p5 = pneg %p1310_p4 }
 0x4ce   : > { %p1317_p8 = por %p1316_p7, %p1315_p6 }
 0x4d0   : > { %p1318_p10 = pnand %p1317_p8, %p1311_p5 }
 0x4d2   : > { %1321 = shalt.err (!%p1318_p10)
}
 0x4d3   : > { %s1322_s28 = scalar_lea.hbm %s975_s30, 128  ;;  %s1326_s23 = scalar_lea.hbm %s1675_s7, 256 }
 0x4d4   : > { %p1323_p11 = scmp.ne.s32.totalorder %s975_s30, %s1322_s28  ;;  %p1327_p0 = scmp.lt.s32.totalorder %s975_s30, %s1675_s7 }
 0x4d5   : > { %p1328_p1 = scmp.lt.s32.totalorder %s1326_s23, %s1322_s28 }
 0x4d6   : > { %p1324_p12 = pnand %p1323_p11, %p1497_p3 }
 0x4d7   : > { %p1329_p2 = por %p1328_p1, %p1327_p0 }
 0x4d8   : > { %p1325_p13 = pneg %p1324_p12 }
 0x4da   : > { %p1330_p4 = pnand %p1329_p2, %p1325_p13 }
 0x4dc   : > { %1333 = shalt.err (!%p1330_p4)
}
 0x4dd   : > { %1224 = dma.vmem_to_hbm [thread:$0]  (%p1497_p3), %s978_s11, 128, %s975_s30, %s963_s14  }
 0x4de PF: > { %s1696_s22 = sld [smem:[#allocation10_spill]]  ;;  %p1230_p5 = scmp.ge.s32.totalorder %s1400_s8, 2 }
 0x4e0   : > { %p1227_p6 = pnand %p1230_p5, %p1507_p9 }
 0x4e2   : > { %p1228_p7 = pneg %p1227_p6 }
 0x4e4   : > { %s989_s0 = sand.u32 1, %s1696_s22  }
 0x4e5   : > { %s990_s24 = scalar_lea.sflag [#allocation8], %s989_s0 }
 0x4e6   : > { %1367 = dma.done.wait (%p1228_p7), %s990_s24, 128  }
 0x4e7   : > { %1369 = vsyncadd (%p1228_p7), %s990_s24, 4294967168  ;;  %s20_s8 = sadd.s32 1, %s1400_s8   ;;  %s1698_s26 = sld [smem:[#allocation11_spill]] }
 0x4e8   : > { %p17_p8 = scmp.ge.s32.totalorder %s20_s8, 18   ;;  %s1699_s27 = sld [smem:[#allocation17_spill]] }
 0x4e9   : > { %s1700_s13 = sld [smem:[#allocation12_spill]]  ;;  %s1704_s24 = smov %s1376_s25 }
 0x4ea   : > { %s1701_s28 = sld [smem:[#allocation13_spill]] }
 0x4eb   : > { %s1702_s29 = sld [smem:[#allocation14_spill]]  ;;  %19 = sbr.rel (!%p17_p8) target bundleno = 7 (0x7), region = 114 }
 0x4ec   : > { %s1703_s30 = sld [smem:[#allocation15_spill]] }
 0x4ed   : > { %s1705_s25 = smov %s1698_s26 }
 0x4ee   : > { %s1706_s26 = smov %s1699_s27 }
 0x4ef   : > { %s1707_s27 = smov %s1700_s13 }
 0x4f0   :  { %995 = vsyncpa [#allocation8], 1 }
 0x4f1   :  { %997 = vsyncpa [#allocation8 + $0x1], 1 }

</bundles_post_ra>
